<compile_context>
chip_gen: v7x
topology: tpu7x:2x2x1
jax: 0.10.0
libtpu: 0.0.40
codegen_flags: <defaults>
</compile_context>

<pallas_src>
import math

import numpy as np
import jax
import jax.numpy as jnp
from jax.experimental import pallas as pl
from jax.experimental.pallas import tpu as pltpu


def _pt_bilinear_matrix(in_size: int, scale: float) -> np.ndarray:
    """1-D interpolation matrix A (in_size, out_size) matching
    torch.nn.functional.interpolate(mode='bilinear', align_corners=False,
    scale_factor=scale) along one axis: out = A^T @ x."""
    out_size = int(math.floor(in_size * scale))
    A = np.zeros((in_size, out_size), dtype=np.float64)
    for i in range(out_size):
        src = (i + 0.5) / scale - 0.5            # PyTorch half-pixel source index
        src = min(max(src, 0.0), in_size - 1)
        i0 = min(int(math.floor(src)), in_size - 1)
        i1 = min(i0 + 1, in_size - 1)
        w1 = src - i0
        A[i0, i] += 1.0 - w1
        A[i1, i] += w1
    return A


def _vmem_plan():
    """(vmem_limit_bytes, per-step block budget) per TPU generation."""
    try:
        cap = int(pltpu.get_tpu_info().vmem_capacity_bytes)
    except Exception:
        cap = 64 * 1024 * 1024                    # conservative (v7x-safe) fallback
    if cap >= 100 * 1024 * 1024:                  # v5e / v6e: 128 MiB physical
        return 96 * 1024 * 1024, 56 * 1024 * 1024
    return 40 * 1024 * 1024, 24 * 1024 * 1024     # v7x: 64 MiB physical


def _make_kernel(nb: int, C: int, H: int, Cout: int, Hout: int, remap: bool):
    """nb images per grid step. Input slab block is (nb*C*H, W)."""
    rows = C * H

    def kernel(*refs):
        if remap:
            x_ref, aw_ref, ah_ref, wm_ref, o_ref = refs
        else:
            x_ref, aw_ref, ah_ref, o_ref = refs

        aw = aw_ref[...]                       # (W, Wp)    input dtype (bf16 stays bf16)
        aht = ah_ref[...]                      # (Hout, H)  f32

        # W-resample of all nb images / channels: ONE MXU matmul, f32 accumulate.
        y = jnp.dot(x_ref[...], aw, preferred_element_type=jnp.float32)  # (nb*C*H, Wp)

        for n in range(nb):                    # static unroll (nb kept small)
            base = n * rows
            # Factorized H-resample: one small MXU matmul per channel.
            zs = []
            for c in range(C):
                yc = y[base + c * H: base + (c + 1) * H, :]               # (H, Wp)
                zs.append(jnp.dot(aht, yc,
                                  preferred_element_type=jnp.float32))   # (Hout, Wp)
            if remap:
                # Tiny (Cout, C) channel mix at the smallest data stage.
                for o in range(Cout):
                    acc = zs[0] * wm_ref[o, 0]
                    for c in range(1, C):
                        acc = acc + zs[c] * wm_ref[o, c]
                    o_ref[n, o] = acc.astype(o_ref.dtype)
            else:
                for c in range(C):
                    o_ref[n, c] = zs[c].astype(o_ref.dtype)

    return kernel


class SpatialRescalerPallas:
    def __init__(self, n_stages=1, method='bilinear', multiplier=0.5,
                 in_channels=3, out_channels=None, bias=False, key=None):
        assert n_stages >= 0
        assert method == 'bilinear'   # TODO(synk): other interpolation modes
        assert not bias               # TODO(synk): bias term for the 1x1 conv
        self.n_stages = n_stages
        self.multiplier = multiplier
        self.in_channels = in_channels
        self.remap_output = out_channels is not None
        self.out_channels = out_channels if self.remap_output else in_channels
        if self.remap_output:
            key = jax.random.PRNGKey(0) if key is None else key
            bound = 1.0 / math.sqrt(in_channels)  # nn.Conv2d default init range
            self.weight = jax.random.uniform(
                key, (self.out_channels, in_channels), jnp.float32, -bound, bound)
        else:
            self.weight = None
        self._cache = {}

    # ---- host-side: compose ALL stages into one (Hout,H) / (W,Wout) pair ----
    def _compose(self, H, W):
        aht = np.eye(H, dtype=np.float64)
        aw = np.eye(W, dtype=np.float64)
        h, w = H, W
        for _ in range(self.n_stages):
            Ah = _pt_bilinear_matrix(h, self.multiplier)
            Aw = _pt_bilinear_matrix(w, self.multiplier)
            aht = Ah.T @ aht
            aw = aw @ Aw
            h, w = Ah.shape[1], Aw.shape[1]
        return aht, aw, h, w

    def _build(self, N, C, H, W, dtype):
        Cout = self.out_channels
        remap = self.remap_output
        itemsize = jnp.dtype(dtype).itemsize
        rows = C * H

        aht, aw, Hout, Wout = self._compose(H, W)
        # Lane-dense / full MXU-N-tile output width: pad aw columns to mult of 128.
        Wp = max(128, ((Wout + 127) // 128) * 128)
        aw_p = np.zeros((W, Wp), dtype=np.float64)
        aw_p[:, :Wout] = aw

        aw_j = jnp.asarray(aw_p, dtype=dtype)            # MXU operand in input dtype
        ah_j = jnp.asarray(aht, dtype=jnp.float32)
        wm_j = jnp.asarray(self.weight, jnp.float32) if remap else None

        vmem_limit, budget = _vmem_plan()

        def block_bytes(nb):
            b_in = 2 * nb * rows * W * itemsize                 # double-buffered input
            b_out = 2 * nb * Cout * Hout * Wp * itemsize        # double-buffered output
            b_const = 2 * (W * Wp * itemsize + Hout * H * 4)    # constants (2x buffered)
            b_y = nb * rows * Wp * 4                            # live f32 intermediate
            b_tmp = nb * (C + Cout) * Hout * Wp * 4             # per-image z / mix temps
            return b_in + b_out + b_const + b_y + b_tmp

        divisors = [d for d in range(N, 0, -1) if N % d == 0]   # descending
        legal = [d for d in divisors if d == N or (d * rows) % 8 == 0]
        fitting = [d for d in legal if d <= 16 and block_bytes(d) <= budget]
        multi = [d for d in fitting if N // d >= 2]             # keep >=2 grid steps
        if multi:
            nb = multi[0]
        elif fitting:
            nb = fitting[-1]
        else:
            nb = legal[-1]                                      # smallest legal; rely on limit

        kernel = _make_kernel(nb, C, H, Cout, Hout, remap)

        in_specs = [
            pl.BlockSpec((nb * rows, W), lambda i: (i, 0)),
            pl.BlockSpec((W, Wp), lambda i: (0, 0)),
            pl.BlockSpec((Hout, H), lambda i: (0, 0)),
        ]
        if remap:
            # Tiny (Cout, C) mix weights: scalar reads from SMEM.
            in_specs.append(pl.BlockSpec(memory_space=pltpu.MemorySpace.SMEM))

        call = pl.pallas_call(
            kernel,
            out_shape=jax.ShapeDtypeStruct((N, Cout, Hout, Wp), dtype),
            grid=(N // nb,),
            in_specs=in_specs,
            out_specs=pl.BlockSpec((nb, Cout, Hout, Wp), lambda i: (i, 0, 0, 0)),
            compiler_params=pltpu.CompilerParams(
                # TODO(synk): pltpu.CORE_PARALLEL on v7x for 2-TC batch sharding.
                dimension_semantics=("parallel",),
                vmem_limit_bytes=vmem_limit),
        )

        if remap:
            def run(x, aw_a, ah_a, wm_a):
                out = call(x.reshape(N * rows, W), aw_a, ah_a, wm_a)
                return out[:, :, :, :Wout]
        else:
            def run(x, aw_a, ah_a):
                out = call(x.reshape(N * rows, W), aw_a, ah_a)
                return out[:, :, :, :Wout]

        ops = (aw_j, ah_j) + ((wm_j,) if remap else ())
        return jax.jit(run), ops

    def __call__(self, x):
        N, C, H, W = x.shape
        assert C == self.in_channels
        key = (N, C, H, W, str(x.dtype))
        if key not in self._cache:
            self._cache[key] = self._build(N, C, H, W, x.dtype)
        run, ops = self._cache[key]
        return run(x, *ops)

    def encode(self, x):
        return self(x)


if __name__ == "__main__":
    key = jax.random.PRNGKey(0)
    kx, kw = jax.random.split(key)

    N, Cin, H, W = 2, 4, 16, 16
    Cout = 8
    x = jax.random.normal(kx, (N, Cin, H, W), dtype=jnp.float32)

    # Remap path (1x1 conv, no bias).
    model = SpatialRescalerPallas(n_stages=1, method='bilinear', multiplier=0.5,
                                  in_channels=Cin, out_channels=Cout,
                                  bias=False, key=kw)
    out = jax.block_until_ready(model(x))
    assert out.shape == (N, Cout, H // 2, W // 2)

    # Reference: scale_factor=0.5 / even dims -> bilinear (align_corners=False)
    # downsample == exact 2x2 average pooling, then the 1x1 conv (no bias).
    pooled = x.reshape(N, Cin, H // 2, 2, W // 2, 2).mean(axis=(3, 5))
    ref = jnp.einsum('oc,nchw->nohw', model.weight, pooled)
    np.testing.assert_allclose(np.asarray(out), np.asarray(ref),
                               rtol=1e-5, atol=1e-5)

    # No-remap path (out_channels=None).
    model2 = SpatialRescalerPallas(n_stages=1, multiplier=0.5,
                                   in_channels=Cin, out_channels=None)
    out2 = jax.block_until_ready(model2(x))
    np.testing.assert_allclose(np.asarray(out2), np.asarray(pooled),
                               rtol=1e-5, atol=1e-5)

    # Two stages, composed host-side into a single matrix pair.
    model3 = SpatialRescalerPallas(n_stages=2, multiplier=0.5,
                                   in_channels=Cin, out_channels=None)
    out3 = jax.block_until_ready(model3(x))
    pooled2 = pooled.reshape(N, Cin, H // 4, 2, W // 4, 2).mean(axis=(3, 5))
    np.testing.assert_allclose(np.asarray(out3), np.asarray(pooled2),
                               rtol=1e-5, atol=1e-5)

    # bf16 fast path: MXU operands stay bf16, f32 accumulation (loose tolerance).
    out_bf = jax.block_until_ready(model2(x.astype(jnp.bfloat16)))
    np.testing.assert_allclose(np.asarray(out_bf, dtype=np.float32),
                               np.asarray(pooled), rtol=5e-2, atol=5e-2)

    print("KERNEL_OK")
</pallas_src>

<mosaic_0001>
module attributes {stable_mosaic.version = 11 : i64} {
  func.func @kernel(%arg0: i32, %arg1: memref<64x16xf32, #tpu.memory_space<vmem>>, %arg2: memref<16x128xf32, #tpu.memory_space<vmem>>, %arg3: memref<8x16xf32, #tpu.memory_space<vmem>>, %arg4: memref<8x4xf32, #tpu.memory_space<smem>>, %arg5: memref<1x8x8x128xf32, #tpu.memory_space<vmem>>) attributes {dimension_semantics = [#tpu.dimension_semantics<parallel>], iteration_bounds = array<i64: 2>, scalar_prefetch = 0 : i64, scratch_operands = 0 : i64, tpu.core_type = #tpu.core_type<tc>, window_params = [{transform_indices = @transform_0, window_bounds = array<i64: 64, 16>}, {pipeline_mode = #tpu.pipeline_mode<synchronous>, transform_indices = @transform_1, window_bounds = array<i64: 16, 128>}, {pipeline_mode = #tpu.pipeline_mode<synchronous>, transform_indices = @transform_2, window_bounds = array<i64: 8, 16>}, {transform_indices = @transform_3, window_bounds = array<i64: 8, 4>}, {transform_indices = @transform_4, window_bounds = array<i64: 1, 8, 8, 128>}]} {
    %c0 = arith.constant 0 : index
    %c0_0 = arith.constant 0 : index
    %0 = vector.load %arg2[%c0, %c0_0] : memref<16x128xf32, #tpu.memory_space<vmem>>, vector<16x128xf32>
    %c0_1 = arith.constant 0 : index
    %c0_2 = arith.constant 0 : index
    %1 = vector.load %arg3[%c0_1, %c0_2] : memref<8x16xf32, #tpu.memory_space<vmem>>, vector<8x16xf32>
    %c0_3 = arith.constant 0 : index
    %c0_4 = arith.constant 0 : index
    %2 = vector.load %arg1[%c0_3, %c0_4] : memref<64x16xf32, #tpu.memory_space<vmem>>, vector<64x16xf32>
    %cst = arith.constant dense<0.000000e+00> : vector<64x128xf32>
    %3 = tpu.matmul %2, %0, %cst {dimension_numbers = #tpu.dot_dimension_numbers<[1], [0], [0], [1], [0, 0, 1, 1], [], []>} : vector<64x16xf32>, vector<16x128xf32>, vector<64x128xf32> -> vector<64x128xf32>
    %4 = vector.extract_strided_slice %3 {offsets = [0, 0], sizes = [16, 128], strides = [1, 1]} : vector<64x128xf32> to vector<16x128xf32>
    %cst_5 = arith.constant dense<0.000000e+00> : vector<8x128xf32>
    %5 = tpu.matmul %1, %4, %cst_5 {dimension_numbers = #tpu.dot_dimension_numbers<[1], [0], [0], [1], [0, 0, 1, 1], [], []>} : vector<8x16xf32>, vector<16x128xf32>, vector<8x128xf32> -> vector<8x128xf32>
    %6 = vector.extract_strided_slice %3 {offsets = [16, 0], sizes = [16, 128], strides = [1, 1]} : vector<64x128xf32> to vector<16x128xf32>
    %cst_6 = arith.constant dense<0.000000e+00> : vector<8x128xf32>
    %7 = tpu.matmul %1, %6, %cst_6 {dimension_numbers = #tpu.dot_dimension_numbers<[1], [0], [0], [1], [0, 0, 1, 1], [], []>} : vector<8x16xf32>, vector<16x128xf32>, vector<8x128xf32> -> vector<8x128xf32>
    %8 = vector.extract_strided_slice %3 {offsets = [32, 0], sizes = [16, 128], strides = [1, 1]} : vector<64x128xf32> to vector<16x128xf32>
    %cst_7 = arith.constant dense<0.000000e+00> : vector<8x128xf32>
    %9 = tpu.matmul %1, %8, %cst_7 {dimension_numbers = #tpu.dot_dimension_numbers<[1], [0], [0], [1], [0, 0, 1, 1], [], []>} : vector<8x16xf32>, vector<16x128xf32>, vector<8x128xf32> -> vector<8x128xf32>
    %10 = vector.extract_strided_slice %3 {offsets = [48, 0], sizes = [16, 128], strides = [1, 1]} : vector<64x128xf32> to vector<16x128xf32>
    %cst_8 = arith.constant dense<0.000000e+00> : vector<8x128xf32>
    %11 = tpu.matmul %1, %10, %cst_8 {dimension_numbers = #tpu.dot_dimension_numbers<[1], [0], [0], [1], [0, 0, 1, 1], [], []>} : vector<8x16xf32>, vector<16x128xf32>, vector<8x128xf32> -> vector<8x128xf32>
    %c0_9 = arith.constant 0 : index
    %c0_10 = arith.constant 0 : index
    %12 = memref.load %arg4[%c0_9, %c0_10] : memref<8x4xf32, #tpu.memory_space<smem>>
    %13 = vector.broadcast %12 : f32 to vector<8x128xf32>
    %14 = arith.mulf %5, %13 : vector<8x128xf32>
    %c0_11 = arith.constant 0 : index
    %c1 = arith.constant 1 : index
    %15 = memref.load %arg4[%c0_11, %c1] : memref<8x4xf32, #tpu.memory_space<smem>>
    %16 = vector.broadcast %15 : f32 to vector<8x128xf32>
    %17 = arith.mulf %7, %16 : vector<8x128xf32>
    %18 = arith.addf %14, %17 : vector<8x128xf32>
    %c0_12 = arith.constant 0 : index
    %c2 = arith.constant 2 : index
    %19 = memref.load %arg4[%c0_12, %c2] : memref<8x4xf32, #tpu.memory_space<smem>>
    %20 = vector.broadcast %19 : f32 to vector<8x128xf32>
    %21 = arith.mulf %9, %20 : vector<8x128xf32>
    %22 = arith.addf %18, %21 : vector<8x128xf32>
    %c0_13 = arith.constant 0 : index
    %c3 = arith.constant 3 : index
    %23 = memref.load %arg4[%c0_13, %c3] : memref<8x4xf32, #tpu.memory_space<smem>>
    %24 = vector.broadcast %23 : f32 to vector<8x128xf32>
    %25 = arith.mulf %11, %24 : vector<8x128xf32>
    %26 = arith.addf %22, %25 : vector<8x128xf32>
    %c0_14 = arith.constant 0 : index
    %c0_15 = arith.constant 0 : index
    %c0_16 = arith.constant 0 : index
    %c0_17 = arith.constant 0 : index
    %27 = vector.load %arg5[%c0_14, %c0_15, %c0_16, %c0_17] : memref<1x8x8x128xf32, #tpu.memory_space<vmem>>, vector<1x1x8x128xf32>
    %28 = vector.shape_cast %27 : vector<1x1x8x128xf32> to vector<8x128xf32>
    %29 = vector.shape_cast %26 : vector<8x128xf32> to vector<1x1x8x128xf32>
    tpu.vector_store %arg5[%c0_14, %c0_15, %c0_16, %c0_17], %29 {strides = array<i32>} : memref<1x8x8x128xf32, #tpu.memory_space<vmem>>, vector<1x1x8x128xf32>,
    %c1_18 = arith.constant 1 : index
    %c0_19 = arith.constant 0 : index
    %30 = memref.load %arg4[%c1_18, %c0_19] : memref<8x4xf32, #tpu.memory_space<smem>>
    %31 = vector.broadcast %30 : f32 to vector<8x128xf32>
    %32 = arith.mulf %5, %31 : vector<8x128xf32>
    %c1_20 = arith.constant 1 : index
    %c1_21 = arith.constant 1 : index
    %33 = memref.load %arg4[%c1_20, %c1_21] : memref<8x4xf32, #tpu.memory_space<smem>>
    %34 = vector.broadcast %33 : f32 to vector<8x128xf32>
    %35 = arith.mulf %7, %34 : vector<8x128xf32>
    %36 = arith.addf %32, %35 : vector<8x128xf32>
    %c1_22 = arith.constant 1 : index
    %c2_23 = arith.constant 2 : index
    %37 = memref.load %arg4[%c1_22, %c2_23] : memref<8x4xf32, #tpu.memory_space<smem>>
    %38 = vector.broadcast %37 : f32 to vector<8x128xf32>
    %39 = arith.mulf %9, %38 : vector<8x128xf32>
    %40 = arith.addf %36, %39 : vector<8x128xf32>
    %c1_24 = arith.constant 1 : index
    %c3_25 = arith.constant 3 : index
    %41 = memref.load %arg4[%c1_24, %c3_25] : memref<8x4xf32, #tpu.memory_space<smem>>
    %42 = vector.broadcast %41 : f32 to vector<8x128xf32>
    %43 = arith.mulf %11, %42 : vector<8x128xf32>
    %44 = arith.addf %40, %43 : vector<8x128xf32>
    %c0_26 = arith.constant 0 : index
    %c1_27 = arith.constant 1 : index
    %c0_28 = arith.constant 0 : index
    %c0_29 = arith.constant 0 : index
    %45 = vector.load %arg5[%c0_26, %c1_27, %c0_28, %c0_29] : memref<1x8x8x128xf32, #tpu.memory_space<vmem>>, vector<1x1x8x128xf32>
    %46 = vector.shape_cast %45 : vector<1x1x8x128xf32> to vector<8x128xf32>
    %47 = vector.shape_cast %44 : vector<8x128xf32> to vector<1x1x8x128xf32>
    tpu.vector_store %arg5[%c0_26, %c1_27, %c0_28, %c0_29], %47 {strides = array<i32>} : memref<1x8x8x128xf32, #tpu.memory_space<vmem>>, vector<1x1x8x128xf32>,
    %c2_30 = arith.constant 2 : index
    %c0_31 = arith.constant 0 : index
    %48 = memref.load %arg4[%c2_30, %c0_31] : memref<8x4xf32, #tpu.memory_space<smem>>
    %49 = vector.broadcast %48 : f32 to vector<8x128xf32>
    %50 = arith.mulf %5, %49 : vector<8x128xf32>
    %c2_32 = arith.constant 2 : index
    %c1_33 = arith.constant 1 : index
    %51 = memref.load %arg4[%c2_32, %c1_33] : memref<8x4xf32, #tpu.memory_space<smem>>
    %52 = vector.broadcast %51 : f32 to vector<8x128xf32>
    %53 = arith.mulf %7, %52 : vector<8x128xf32>
    %54 = arith.addf %50, %53 : vector<8x128xf32>
    %c2_34 = arith.constant 2 : index
    %c2_35 = arith.constant 2 : index
    %55 = memref.load %arg4[%c2_34, %c2_35] : memref<8x4xf32, #tpu.memory_space<smem>>
    %56 = vector.broadcast %55 : f32 to vector<8x128xf32>
    %57 = arith.mulf %9, %56 : vector<8x128xf32>
    %58 = arith.addf %54, %57 : vector<8x128xf32>
    %c2_36 = arith.constant 2 : index
    %c3_37 = arith.constant 3 : index
    %59 = memref.load %arg4[%c2_36, %c3_37] : memref<8x4xf32, #tpu.memory_space<smem>>
    %60 = vector.broadcast %59 : f32 to vector<8x128xf32>
    %61 = arith.mulf %11, %60 : vector<8x128xf32>
    %62 = arith.addf %58, %61 : vector<8x128xf32>
    %c0_38 = arith.constant 0 : index
    %c2_39 = arith.constant 2 : index
    %c0_40 = arith.constant 0 : index
    %c0_41 = arith.constant 0 : index
    %63 = vector.load %arg5[%c0_38, %c2_39, %c0_40, %c0_41] : memref<1x8x8x128xf32, #tpu.memory_space<vmem>>, vector<1x1x8x128xf32>
    %64 = vector.shape_cast %63 : vector<1x1x8x128xf32> to vector<8x128xf32>
    %65 = vector.shape_cast %62 : vector<8x128xf32> to vector<1x1x8x128xf32>
    tpu.vector_store %arg5[%c0_38, %c2_39, %c0_40, %c0_41], %65 {strides = array<i32>} : memref<1x8x8x128xf32, #tpu.memory_space<vmem>>, vector<1x1x8x128xf32>,
    %c3_42 = arith.constant 3 : index
    %c0_43 = arith.constant 0 : index
    %66 = memref.load %arg4[%c3_42, %c0_43] : memref<8x4xf32, #tpu.memory_space<smem>>
    %67 = vector.broadcast %66 : f32 to vector<8x128xf32>
    %68 = arith.mulf %5, %67 : vector<8x128xf32>
    %c3_44 = arith.constant 3 : index
    %c1_45 = arith.constant 1 : index
    %69 = memref.load %arg4[%c3_44, %c1_45] : memref<8x4xf32, #tpu.memory_space<smem>>
    %70 = vector.broadcast %69 : f32 to vector<8x128xf32>
    %71 = arith.mulf %7, %70 : vector<8x128xf32>
    %72 = arith.addf %68, %71 : vector<8x128xf32>
    %c3_46 = arith.constant 3 : index
    %c2_47 = arith.constant 2 : index
    %73 = memref.load %arg4[%c3_46, %c2_47] : memref<8x4xf32, #tpu.memory_space<smem>>
    %74 = vector.broadcast %73 : f32 to vector<8x128xf32>
    %75 = arith.mulf %9, %74 : vector<8x128xf32>
    %76 = arith.addf %72, %75 : vector<8x128xf32>
    %c3_48 = arith.constant 3 : index
    %c3_49 = arith.constant 3 : index
    %77 = memref.load %arg4[%c3_48, %c3_49] : memref<8x4xf32, #tpu.memory_space<smem>>
    %78 = vector.broadcast %77 : f32 to vector<8x128xf32>
    %79 = arith.mulf %11, %78 : vector<8x128xf32>
    %80 = arith.addf %76, %79 : vector<8x128xf32>
    %c0_50 = arith.constant 0 : index
    %c3_51 = arith.constant 3 : index
    %c0_52 = arith.constant 0 : index
    %c0_53 = arith.constant 0 : index
    %81 = vector.load %arg5[%c0_50, %c3_51, %c0_52, %c0_53] : memref<1x8x8x128xf32, #tpu.memory_space<vmem>>, vector<1x1x8x128xf32>
    %82 = vector.shape_cast %81 : vector<1x1x8x128xf32> to vector<8x128xf32>
    %83 = vector.shape_cast %80 : vector<8x128xf32> to vector<1x1x8x128xf32>
    tpu.vector_store %arg5[%c0_50, %c3_51, %c0_52, %c0_53], %83 {strides = array<i32>} : memref<1x8x8x128xf32, #tpu.memory_space<vmem>>, vector<1x1x8x128xf32>,
    %c4 = arith.constant 4 : index
    %c0_54 = arith.constant 0 : index
    %84 = memref.load %arg4[%c4, %c0_54] : memref<8x4xf32, #tpu.memory_space<smem>>
    %85 = vector.broadcast %84 : f32 to vector<8x128xf32>
    %86 = arith.mulf %5, %85 : vector<8x128xf32>
    %c4_55 = arith.constant 4 : index
    %c1_56 = arith.constant 1 : index
    %87 = memref.load %arg4[%c4_55, %c1_56] : memref<8x4xf32, #tpu.memory_space<smem>>
    %88 = vector.broadcast %87 : f32 to vector<8x128xf32>
    %89 = arith.mulf %7, %88 : vector<8x128xf32>
    %90 = arith.addf %86, %89 : vector<8x128xf32>
    %c4_57 = arith.constant 4 : index
    %c2_58 = arith.constant 2 : index
    %91 = memref.load %arg4[%c4_57, %c2_58] : memref<8x4xf32, #tpu.memory_space<smem>>
    %92 = vector.broadcast %91 : f32 to vector<8x128xf32>
    %93 = arith.mulf %9, %92 : vector<8x128xf32>
    %94 = arith.addf %90, %93 : vector<8x128xf32>
    %c4_59 = arith.constant 4 : index
    %c3_60 = arith.constant 3 : index
    %95 = memref.load %arg4[%c4_59, %c3_60] : memref<8x4xf32, #tpu.memory_space<smem>>
    %96 = vector.broadcast %95 : f32 to vector<8x128xf32>
    %97 = arith.mulf %11, %96 : vector<8x128xf32>
    %98 = arith.addf %94, %97 : vector<8x128xf32>
    %c0_61 = arith.constant 0 : index
    %c4_62 = arith.constant 4 : index
    %c0_63 = arith.constant 0 : index
    %c0_64 = arith.constant 0 : index
    %99 = vector.load %arg5[%c0_61, %c4_62, %c0_63, %c0_64] : memref<1x8x8x128xf32, #tpu.memory_space<vmem>>, vector<1x1x8x128xf32>
    %100 = vector.shape_cast %99 : vector<1x1x8x128xf32> to vector<8x128xf32>
    %101 = vector.shape_cast %98 : vector<8x128xf32> to vector<1x1x8x128xf32>
    tpu.vector_store %arg5[%c0_61, %c4_62, %c0_63, %c0_64], %101 {strides = array<i32>} : memref<1x8x8x128xf32, #tpu.memory_space<vmem>>, vector<1x1x8x128xf32>,
    %c5 = arith.constant 5 : index
    %c0_65 = arith.constant 0 : index
    %102 = memref.load %arg4[%c5, %c0_65] : memref<8x4xf32, #tpu.memory_space<smem>>
    %103 = vector.broadcast %102 : f32 to vector<8x128xf32>
    %104 = arith.mulf %5, %103 : vector<8x128xf32>
    %c5_66 = arith.constant 5 : index
    %c1_67 = arith.constant 1 : index
    %105 = memref.load %arg4[%c5_66, %c1_67] : memref<8x4xf32, #tpu.memory_space<smem>>
    %106 = vector.broadcast %105 : f32 to vector<8x128xf32>
    %107 = arith.mulf %7, %106 : vector<8x128xf32>
    %108 = arith.addf %104, %107 : vector<8x128xf32>
    %c5_68 = arith.constant 5 : index
    %c2_69 = arith.constant 2 : index
    %109 = memref.load %arg4[%c5_68, %c2_69] : memref<8x4xf32, #tpu.memory_space<smem>>
    %110 = vector.broadcast %109 : f32 to vector<8x128xf32>
    %111 = arith.mulf %9, %110 : vector<8x128xf32>
    %112 = arith.addf %108, %111 : vector<8x128xf32>
    %c5_70 = arith.constant 5 : index
    %c3_71 = arith.constant 3 : index
    %113 = memref.load %arg4[%c5_70, %c3_71] : memref<8x4xf32, #tpu.memory_space<smem>>
    %114 = vector.broadcast %113 : f32 to vector<8x128xf32>
    %115 = arith.mulf %11, %114 : vector<8x128xf32>
    %116 = arith.addf %112, %115 : vector<8x128xf32>
    %c0_72 = arith.constant 0 : index
    %c5_73 = arith.constant 5 : index
    %c0_74 = arith.constant 0 : index
    %c0_75 = arith.constant 0 : index
    %117 = vector.load %arg5[%c0_72, %c5_73, %c0_74, %c0_75] : memref<1x8x8x128xf32, #tpu.memory_space<vmem>>, vector<1x1x8x128xf32>
    %118 = vector.shape_cast %117 : vector<1x1x8x128xf32> to vector<8x128xf32>
    %119 = vector.shape_cast %116 : vector<8x128xf32> to vector<1x1x8x128xf32>
    tpu.vector_store %arg5[%c0_72, %c5_73, %c0_74, %c0_75], %119 {strides = array<i32>} : memref<1x8x8x128xf32, #tpu.memory_space<vmem>>, vector<1x1x8x128xf32>,
    %c6 = arith.constant 6 : index
    %c0_76 = arith.constant 0 : index
    %120 = memref.load %arg4[%c6, %c0_76] : memref<8x4xf32, #tpu.memory_space<smem>>
    %121 = vector.broadcast %120 : f32 to vector<8x128xf32>
    %122 = arith.mulf %5, %121 : vector<8x128xf32>
    %c6_77 = arith.constant 6 : index
    %c1_78 = arith.constant 1 : index
    %123 = memref.load %arg4[%c6_77, %c1_78] : memref<8x4xf32, #tpu.memory_space<smem>>
    %124 = vector.broadcast %123 : f32 to vector<8x128xf32>
    %125 = arith.mulf %7, %124 : vector<8x128xf32>
    %126 = arith.addf %122, %125 : vector<8x128xf32>
    %c6_79 = arith.constant 6 : index
    %c2_80 = arith.constant 2 : index
    %127 = memref.load %arg4[%c6_79, %c2_80] : memref<8x4xf32, #tpu.memory_space<smem>>
    %128 = vector.broadcast %127 : f32 to vector<8x128xf32>
    %129 = arith.mulf %9, %128 : vector<8x128xf32>
    %130 = arith.addf %126, %129 : vector<8x128xf32>
    %c6_81 = arith.constant 6 : index
    %c3_82 = arith.constant 3 : index
    %131 = memref.load %arg4[%c6_81, %c3_82] : memref<8x4xf32, #tpu.memory_space<smem>>
    %132 = vector.broadcast %131 : f32 to vector<8x128xf32>
    %133 = arith.mulf %11, %132 : vector<8x128xf32>
    %134 = arith.addf %130, %133 : vector<8x128xf32>
    %c0_83 = arith.constant 0 : index
    %c6_84 = arith.constant 6 : index
    %c0_85 = arith.constant 0 : index
    %c0_86 = arith.constant 0 : index
    %135 = vector.load %arg5[%c0_83, %c6_84, %c0_85, %c0_86] : memref<1x8x8x128xf32, #tpu.memory_space<vmem>>, vector<1x1x8x128xf32>
    %136 = vector.shape_cast %135 : vector<1x1x8x128xf32> to vector<8x128xf32>
    %137 = vector.shape_cast %134 : vector<8x128xf32> to vector<1x1x8x128xf32>
    tpu.vector_store %arg5[%c0_83, %c6_84, %c0_85, %c0_86], %137 {strides = array<i32>} : memref<1x8x8x128xf32, #tpu.memory_space<vmem>>, vector<1x1x8x128xf32>,
    %c7 = arith.constant 7 : index
    %c0_87 = arith.constant 0 : index
    %138 = memref.load %arg4[%c7, %c0_87] : memref<8x4xf32, #tpu.memory_space<smem>>
    %139 = vector.broadcast %138 : f32 to vector<8x128xf32>
    %140 = arith.mulf %5, %139 : vector<8x128xf32>
    %c7_88 = arith.constant 7 : index
    %c1_89 = arith.constant 1 : index
    %141 = memref.load %arg4[%c7_88, %c1_89] : memref<8x4xf32, #tpu.memory_space<smem>>
    %142 = vector.broadcast %141 : f32 to vector<8x128xf32>
    %143 = arith.mulf %7, %142 : vector<8x128xf32>
    %144 = arith.addf %140, %143 : vector<8x128xf32>
    %c7_90 = arith.constant 7 : index
    %c2_91 = arith.constant 2 : index
    %145 = memref.load %arg4[%c7_90, %c2_91] : memref<8x4xf32, #tpu.memory_space<smem>>
    %146 = vector.broadcast %145 : f32 to vector<8x128xf32>
    %147 = arith.mulf %9, %146 : vector<8x128xf32>
    %148 = arith.addf %144, %147 : vector<8x128xf32>
    %c7_92 = arith.constant 7 : index
    %c3_93 = arith.constant 3 : index
    %149 = memref.load %arg4[%c7_92, %c3_93] : memref<8x4xf32, #tpu.memory_space<smem>>
    %150 = vector.broadcast %149 : f32 to vector<8x128xf32>
    %151 = arith.mulf %11, %150 : vector<8x128xf32>
    %152 = arith.addf %148, %151 : vector<8x128xf32>
    %c0_94 = arith.constant 0 : index
    %c7_95 = arith.constant 7 : index
    %c0_96 = arith.constant 0 : index
    %c0_97 = arith.constant 0 : index
    %153 = vector.load %arg5[%c0_94, %c7_95, %c0_96, %c0_97] : memref<1x8x8x128xf32, #tpu.memory_space<vmem>>, vector<1x1x8x128xf32>
    %154 = vector.shape_cast %153 : vector<1x1x8x128xf32> to vector<8x128xf32>
    %155 = vector.shape_cast %152 : vector<8x128xf32> to vector<1x1x8x128xf32>
    tpu.vector_store %arg5[%c0_94, %c7_95, %c0_96, %c0_97], %155 {strides = array<i32>} : memref<1x8x8x128xf32, #tpu.memory_space<vmem>>, vector<1x1x8x128xf32>,
    return
  }
  func.func @transform_0(%arg0: i32) -> (i32, i32) {
    %c0_i32 = arith.constant 0 : i32
    %c0_i32_0 = arith.constant 0 : i32
    return %arg0, %c0_i32 : i32, i32
  }
  func.func @transform_1(%arg0: i32) -> (i32, i32) {
    %c0_i32 = arith.constant 0 : i32
    %c0_i32_0 = arith.constant 0 : i32
    %c0_i32_1 = arith.constant 0 : i32
    return %c0_i32, %c0_i32_0 : i32, i32
  }
  func.func @transform_2(%arg0: i32) -> (i32, i32) {
    %c0_i32 = arith.constant 0 : i32
    %c0_i32_0 = arith.constant 0 : i32
    %c0_i32_1 = arith.constant 0 : i32
    return %c0_i32, %c0_i32_0 : i32, i32
  }
  func.func @transform_3(%arg0: i32) -> (i32, i32) {
    %c0_i32 = arith.constant 0 : i32
    %c0_i32_0 = arith.constant 0 : i32
    %c0_i32_1 = arith.constant 0 : i32
    return %c0_i32, %c0_i32_0 : i32, i32
  }
  func.func @transform_4(%arg0: i32) -> (i32, i32, i32, i32) {
    %c0_i32 = arith.constant 0 : i32
    %c0_i32_0 = arith.constant 0 : i32
    %c0_i32_1 = arith.constant 0 : i32
    %c0_i32_2 = arith.constant 0 : i32
    return %arg0, %c0_i32, %c0_i32_0, %c0_i32_1 : i32, i32, i32, i32
  }
}

</mosaic_0001>

<bundles_post_ra>
// kernel: run.1
= control target key start
LH: loop header
LB: loop body
LE: loop exit
PB: predicated region body
PF: predicated region fallthrough
CT: control target
= control target key end

     0   :  { %s1668_s0 = inlined_call_operand.hbm [shape: f32[128,16], index: 0, kind: input, shape index: {}]   ;;  %s1669_s1 = inlined_call_operand.vmem [shape: f32[16,128], index: 1, kind: input, shape index: {}]   ;;  %s1670_s2 = inlined_call_operand.hbm [shape: f32[8,16], index: 2, kind: input, shape index: {}]   ;;  %s1671_s3 = inlined_call_operand.vmem [shape: f32[8,4], index: 3, kind: input, shape index: {}]   ;;  %s1672_s4 = inlined_call_operand.hbm [shape: f32[2,8,8,128], index: 4, kind: output, shape index: {}]  }
   0x1   :  { %1692 = sst [smem:[#allocation26_spill]] %s1668_s0 }
   0x2   :  { %1693 = sst [smem:[#allocation27_spill]] %s1669_s1 }
   0x3   :  { %1694 = sst [smem:[#allocation28_spill]] %s1670_s2 }
   0x4   :  { %1695 = sst [smem:[#allocation29_spill]] %s1671_s3 }
   0x5   :  { %1696 = sst [smem:[#allocation30_spill]] %s1672_s4 }
   0x6   :  { %9 = vsyncpa [#allocation3], 0 }
   0x7   :  { %11 = vsyncpa [#allocation3 + $0x1], 0 }
   0x8   :  { %12 = vsyncpa [#allocation7], 0 }
   0x9   :  { %13 = vsyncpa [#allocation5], 0 }
   0xa   :  { %14 = vsyncpa [#allocation4], 0 }
   0xb   :  { %16 = vsyncpa [#allocation4 + $0x1], 0  ;;  %s1323_s15 = smov 0   ;;  %s1325_s16 = smov 0  }
   0xc   :  { %s1327_s17 = smov 0   ;;  %s1329_s18 = smov 0  }
   0xd LB: > { %1697 = sst [smem:[#allocation14_spill]] %s1273_s15  ;;  %s1344_s19 = sadd.s32 4294967295, %s1285_s18   ;;  %s1285_s18 = sphi %s1329_s18, %s1742_s18   ;;  %s1281_s17 = sphi %s1327_s17, %s1745_s17   ;;  %s1277_s16 = sphi %s1325_s16, %s1744_s16   ;;  %s1273_s15 = sphi %s1323_s15, %s1743_s15  }
   0xe   : > { %1698 = sst [smem:[#allocation15_spill]] %s1277_s16  ;;  %s912_s20 = sadd.s32 4294967294, %s1285_s18  }
   0xf   : > { %1699 = sst [smem:[#allocation16_spill]] %s1281_s17  ;;  %s1348_s21 = sadd.s32 1, %s1285_s18  }
  0x10   : > { %1700 = sst [smem:[#allocation17_spill]] %s1285_s18  ;;  %s29_s22 = sadd.s32 1, %s1281_s17 }
  0x11   : > { %1701 = sst [smem:[#allocation18_spill]] %s1344_s19  ;;  %s26_s23 = ssub.s32 %s1285_s18, %s1348_s21 }
  0x12   : > { %1702 = sst [smem:[#allocation19_spill]] %s1348_s21  ;;  %p36_p0 = scmp.ne.s32.totalorder %s1281_s17, %s1277_s16 }
  0x13   : > { %p27_p1 = scmp.eq.s32.totalorder %s26_s23, 0  ;;  %p37_p2 = scmp.eq.s32.totalorder %s1285_s18, 0 }
  0x14   : > { %p42_p3 = scmp.ne.s32.totalorder %s1277_s16, %s1273_s15  ;;  %p1673_p4 = scmp.eq.s32.totalorder %s1344_s19, 0 }
  0x15   : > { %s1360_s24 = scalar_select %p27_p1, %s1281_s17, %s29_s22  }
  0x16   : > { %p1362_p5 = por %p37_p2, %p36_p0  ;;  %p1368_p6 = por %p1673_p4, %p42_p3 }
  0x17   : > { %1703 = sst [smem:[#allocation20_spill]] %s1360_s24  ;;  %p129_p7 = scmp.eq.s32.totalorder %s1344_s19, 1 }
  0x18   : > { %s1705_s26 = scalar_select %p1368_p6, 1, 0 }
  0x19   : > { %p135_p8 = scmp.eq.s32.totalorder %s912_s20, 1  ;;  %p913_p9 = scmp.ge.s32.totalorder %s1285_s18, 1 }
  0x1a   : > { %p142_p10 = scmp.lt.s32.totalorder %s1285_s18, 3  ;;  %p1375_p11 = por %p129_p7, %p36_p0 }
  0x1b   : > { %p1379_p12 = por %p135_p8, %p42_p3  ;;  %s1287_s30 = smov [#allocation6]  }
  0x1c   : > { %s1706_s27 = scalar_select %p1375_p11, 1, 0 }
  0x1d   : > { %s1708_s28 = scalar_select %p1379_p12, 1, 0 }
  0x1e   : > { %1707 = sst [smem:[#allocation21_spill]] %s1706_s27  ;;  %p1383_p13 = pnand %p913_p9, %p142_p10 }
  0x1f   : > { %1709 = sst [smem:[#allocation22_spill]] %s1708_s28  ;;  %s158_s5 = sshll.u32 %s1287_s30, 4  ;;  %s159_s5 = int_to_ptr.vmem [resolvable:$true] %s158_s5 }
  0x20   : > { %s1710_s29 = scalar_select %p1383_p13, 1, 0 }
  0x21   : > { %p1076_p2 = pneg %p1383_p13  ;;  %p1093_p4 = scmp.lt.s32.totalorder %s1285_s18, 2 }
  0x22   : > { %p1711_p0 = scmp.eq.s32.totalorder %s1344_s19, 0  ;;  %s1713_s3 = sld [smem:[#allocation29_spill]] }
  0x23   : > { %p1402_p3 = pnand %p1093_p4, %p1362_p5  ;;  %s1715_s2 = sld [smem:[#allocation28_spill]] }
  0x24   : > { %p1393_p7 = pnand %p1076_p2, %p1711_p0 }
  0x25   : > { %s1714_s10 = scalar_select %p1402_p3, 1, 0 }
  0x26   : > { %p1140_p9 = pneg %p1393_p7 }
  0x28   : > { %s169_s9 = sshll.u32 %s1713_s3, 4  ;;  %s1406_s9 = int_to_ptr.vmem [resolvable:$true] %s169_s9 }
  0x29   : > { %s1138_s13 = scalar_lea.hbm %s1715_s2, 128 }
  0x2a   : > { %p1139_p8 = scmp.ne.s32.totalorder %s1715_s2, %s1138_s13  ;;  %p1145_p4 = scmp.lt.u32.totalorder %s1138_s13, %s1715_s2 }
  0x2c   : > { %p1141_p10 = pnand %p1140_p9, %p1139_p8 }
  0x2e   : > { %p1142_p2 = pneg %p1141_p10 }
  0x30   : > { %p1147_p5 = pnand %p1145_p4, %p1142_p2 }
  0x32   : > { %1150 = shalt.err (!%p1147_p5)
}
  0x33   : > { %s1151_s25 = scalar_lea.vmem %s159_s5, 128  ;;  %p1159_p11 = scmp.lt.s32.totalorder %s159_s5, %s159_s5 }
  0x34   : > { %p1152_p0 = scmp.ne.s32.totalorder %s159_s5, %s1151_s25  ;;  %p1160_p6 = scmp.lt.s32.totalorder %s1151_s25, %s1151_s25 }
  0x36   : > { %p1154_p1 = pnand %p1152_p0, %p1140_p9  ;;  %p1161_p13 = por %p1160_p6, %p1159_p11 }
  0x38   : > { %p1155_p12 = pneg %p1154_p1 }
  0x3a   : > { %p1162_p3 = pnand %p1161_p13, %p1155_p12 }
  0x3c   : > { %1165 = shalt.err (!%p1162_p3)
}
  0x3d   : > { %1079 = dma.hbm_to_vmem [thread:$0]  (!%p1393_p7), %s1715_s2, 128, %s159_s5, [#allocation7]  }
  0x3e   : > { %s180_s8 = sand.u32 1, %s1281_s17   ;;  %s1166_s11 = scalar_lea.vmem %s1406_s9, 128 }
  0x3f   : > { %p1167_p8 = scmp.ne.s32.totalorder %s1406_s9, %s1166_s11  ;;  %p1174_p11 = scmp.lt.s32.totalorder %s1406_s9, %s1406_s9 }
  0x40   : > { %p1175_p12 = scmp.lt.s32.totalorder %s1166_s11, %s1166_s11 }
  0x41   : > { %p1169_p1 = pnand %p1167_p8, %p1140_p9 }
  0x42   : > { %p1176_p13 = por %p1175_p12, %p1174_p11 }
  0x43   : > { %p1170_p6 = pneg %p1169_p1 }
  0x45   : > { %p1177_p3 = pnand %p1176_p13, %p1170_p6 }
  0x47   : > { %1180 = shalt.err (!%p1177_p3)
}
  0x48   : > { %s1288_s12 = smov [#allocation8]   ;;  %s917_s5 = sshll.u32 %s180_s8, 6 }
  0x49   : > { %1082 = dma.vmem_to_smem (!%p1393_p7), %s1406_s9, 128, %s1288_s12, [#allocation5]  }
  0x4a   : > { %s980_s13 = sshll.u32 %s1285_s18, 10  ;;  %s1716_s0 = sld [smem:[#allocation26_spill]] }
  0x4b   : > { %s184_s23 = scalar_lea.vmem [#allocation2], %s917_s5  ;;  %s1449_s6 = scalar_lea.sflag [#allocation3], %s180_s8 }
  0x4c   : > { %s191_s25 = sshll.u32 %s184_s23, 4  ;;  %p1717_p7 = scmp.ne.s32.totalorder %s1714_s10, 0  ;;  %s1447_s25 = int_to_ptr.vmem [resolvable:$true] %s191_s25 }
  0x4e   : > { %p1183_p10 = pneg %p1717_p7 }
  0x50   : > { %s1445_s22 = scalar_lea.hbm %s1716_s0, %s980_s13  ;;  %s1186_s11 = scalar_lea.hbm %s1716_s0, 2048 }
  0x51   : > { %s1181_s30 = scalar_lea.hbm %s1445_s22, 1024  ;;  %p1187_p5 = scmp.lt.u32.totalorder %s1445_s22, %s1716_s0 }
  0x52   : > { %p1182_p9 = scmp.ne.s32.totalorder %s1445_s22, %s1181_s30  ;;  %p1188_p0 = scmp.lt.u32.totalorder %s1186_s11, %s1181_s30 }
  0x53   : > { %p1190_p1 = scmp.lt.u32.totalorder %s1181_s30, %s1445_s22 }
  0x54   : > { %p1184_p2 = pnand %p1183_p10, %p1182_p9  ;;  %p1189_p8 = por %p1188_p0, %p1187_p5 }
  0x56   : > { %p1185_p4 = pneg %p1184_p2  ;;  %p1191_p6 = por %p1190_p1, %p1189_p8 }
  0x58   : > { %p1192_p11 = pnand %p1191_p6, %p1185_p4 }
  0x5a   : > { %1195 = shalt.err (!%p1192_p11)
}
  0x5b   : > { %s1196_s8 = scalar_lea.vmem %s1447_s25, 1024  ;;  %s1289_s5 = smov [#allocation2]  }
  0x5c   : > { %p1197_p12 = scmp.ne.s32.totalorder %s1447_s25, %s1196_s8  ;;  %s1201_s14 = sshll.u32 %s1289_s5, 4  ;;  %s1202_s14 = int_to_ptr.vmem [resolvable:$false] %s1201_s14 }
  0x5d   : > { %s1203_s20 = scalar_lea.vmem %s1202_s14, 2048  ;;  %p1204_p9 = scmp.lt.s32.totalorder %s1447_s25, %s1202_s14 }
  0x5e   : > { %p1199_p13 = pnand %p1197_p12, %p1183_p10  ;;  %p1205_p2 = scmp.lt.s32.totalorder %s1203_s20, %s1196_s8 }
  0x60   : > { %p1200_p3 = pneg %p1199_p13  ;;  %p1206_p5 = por %p1205_p2, %p1204_p9 }
  0x62   : > { %p1207_p0 = pnand %p1206_p5, %p1200_p3 }
  0x64   : > { %1210 = shalt.err (!%p1207_p0)
}
  0x65   : > { %s1290_s23 = smov 128   ;;  %s1291_s30 = smov 8  }
  0x66   : > { %1086 = dma.hbm_to_vmem [thread:$0]  (!%p1717_p7), %s1445_s22, 1024, %s1447_s25, %s1449_s6, %s1290_s23, %s1290_s23, %s1291_s30  }
  0x67   : > { %p1718_p10 = scmp.ne.s32.totalorder %s1710_s29, 0 }
  0x69   : > { %203 = sbr.rel (%p1718_p10) target bundleno = 602 (0x25a), region = 36 }
  0x70   : > { %s1480_s9 = sand.u32 1, %s1277_s16   ;;  %p1720_p4 = scmp.ne.s32.totalorder %s1705_s26, 0 }
  0x71   : > { %1719 = sst [smem:[#allocation23_spill]] %s1480_s9  ;;  %s1678_s7 = sshll.u32 %s1480_s9, 6 }
  0x72   : > { %s206_s11 = scalar_lea.sflag [#allocation3], %s1480_s9  ;;  %s209_s12 = scalar_lea.vmem [#allocation2], %s1678_s7 }
  0x73   : > { %1256 = dma.done.wait (%p1720_p4), %s206_s11, 1024  }
  0x74   : > { %1258 = vsyncadd (%p1720_p4), %s206_s11, 4294966272  ;;  %p1721_p7 = scmp.eq.s32.totalorder %s1344_s19, 0 }
  0x76   : > { %1260 = dma.done.wait (%p1721_p7), [#allocation7], 128   ;;  %p1722_p8 = pmov %p1721_p7 }
  0x77   : > { %p1723_p1 = pmov %p1721_p7 }
  0x78   : > { %1262 = vsyncadd (%p1722_p8), [#allocation7], 4294967168 }
  0x79   : > { %1264 = dma.done.wait (%p1723_p1), [#allocation5], 128   ;;  %p1724_p6 = pmov %p1723_p1 }
  0x7b   : > { %1266 = vsyncadd (%p1724_p6), [#allocation5], 4294967168 }
  0x7c   : > { %222 = sfence }
  0x7d   : > { %s1725_s1 = sld [smem:[#allocation27_spill]]  ;;  %v247_v2 = vld [vmem:[%s209_s12] sm:$0xff]  ;;  %vm255_vm0 = vcmask 130048   ;;  %v248_v4 = vld [vmem:[%s209_s12 + $0x8] sm:$0xff]  ;;  %v249_v5 = vld [vmem:[%s209_s12 + $0x10] sm:$0xff]  ;;  %v1292_v11 = vmov 0.0|0.0  }
  0x7e   : > { %1008 = vmatprep.mubr.msk.f32.mxu0 %vm255_vm0, %v247_v2  ;;  %v250_v6 = vld [vmem:[%s209_s12 + $0x18] sm:$0xff]  ;;  %v251_v7 = vld [vmem:[%s209_s12 + $0x20] sm:$0xff]  ;;  %v252_v8 = vld [vmem:[%s209_s12 + $0x28] sm:$0xff]  ;;  %1052 = vmatprep.subr.bf16.mxu1 %v1292_v11  ;;  %vm1293_vm1 = vmmov 0   ;;  %v1294_v12 = vmov 0.0   ;;  %s1520_s25 = sld [smem:[#allocation8]] }
  0x7f   : > { %v253_v9 = vld [vmem:[%s209_s12 + $0x30] sm:$0xff]  ;;  %v254_v10 = vld [vmem:[%s209_s12 + $0x38] sm:$0xff]  ;;  %1024 = vmatprep.mubr.msk.f32.mxu1 %vm1293_vm1, %v1294_v12  ;;  %v246_v17 = vld [vmem:[#allocation6] sm:$0xff]  ;;  %s1522_s6 = sld [smem:[#allocation8 + $0x80]]  ;;  %s1536_s30 = sld [smem:[#allocation8 + $0x1]] }
  0x80   : > { %s1524_s13 = sld [smem:[#allocation8 + $0x100]]  ;;  %s1538_s11 = sld [smem:[#allocation8 + $0x81]] }
  0x81   : > { %s1526_s8 = sld [smem:[#allocation8 + $0x180]]  ;;  %s1540_s12 = sld [smem:[#allocation8 + $0x101]] }
  0x82   : > { %s1528_s5 = sld [smem:[#allocation8 + $0x200]]  ;;  %s1542_s29 = sld [smem:[#allocation8 + $0x181]] }
  0x83   : > { %v244_v0 = vld [vmem:[%s1725_s1] sm:$0xff]  ;;  %v245_v1 = vld [vmem:[%s1725_s1 + $0x8] sm:$0xff]  ;;  %s1530_s14 = sld [smem:[#allocation8 + $0x280]]  ;;  %s1544_s10 = sld [smem:[#allocation8 + $0x201]] }
  0x84   : > { %v1048_v3 = vpack.c.bf16 %v245_v1, %v244_v0  ;;  %s1532_s20 = sld [smem:[#allocation8 + $0x300]]  ;;  %s1546_s22 = sld [smem:[#allocation8 + $0x281]]  ;;  %v669_v26 = vstv %s1520_s25 }
  0x85   : > { %s1534_s23 = sld [smem:[#allocation8 + $0x380]]  ;;  %s1548_s26 = sld [smem:[#allocation8 + $0x301]]  ;;  %v685_v27 = vstv %s1522_s6  ;;  %v672_v34 = vstv %s1536_s30 }
  0x86   : > { %1049 = vmatprep.subr.bf16.mxu0 %v1048_v3  ;;  %s1550_s7 = sld [smem:[#allocation8 + $0x381]]  ;;  %s1552_s0 = sld [smem:[#allocation8 + $0x2]]  ;;  %v702_v28 = vstv %s1524_s13  ;;  %v688_v35 = vstv %s1538_s11 }
  0x87   : > { %1051 = vmatpush3.bf16.msra.mxu0 %v1048_v3  ;;  %s1554_s1 = sld [smem:[#allocation8 + $0x82]]  ;;  %s1568_s18 = sld [smem:[#allocation8 + $0x3]]  ;;  %v719_v29 = vstv %s1526_s8  ;;  %v705_v36 = vstv %s1540_s12 }
  0x88   : > { %s1556_s2 = sld [smem:[#allocation8 + $0x102]]  ;;  %s1570_s28 = sld [smem:[#allocation8 + $0x83]]  ;;  %v736_v30 = vstv %s1528_s5  ;;  %v722_v37 = vstv %s1542_s29 }
  0x89   : > { %s1558_s3 = sld [smem:[#allocation8 + $0x182]]  ;;  %s1572_s15 = sld [smem:[#allocation8 + $0x103]]  ;;  %v753_v31 = vstv %s1530_s14  ;;  %v739_v38 = vstv %s1544_s10 }
  0x8a   : > { %1009 = vmatmul.mubr.msk.f32.vlgmr.msra.gmra.mrb[0].mxu0 %vm255_vm0, %v248_v4  ;;  %s1560_s24 = sld [smem:[#allocation8 + $0x202]]  ;;  %s1574_s27 = sld [smem:[#allocation8 + $0x183]]  ;;  %v770_v32 = vstv %s1532_s20  ;;  %v756_v39 = vstv %s1546_s22 }
  0x8b   : > { %1011 = vmatprep.mubr.msk.f32.mxu0 %vm255_vm0, %v249_v5  ;;  %s1562_s17 = sld [smem:[#allocation8 + $0x282]]  ;;  %s1576_s4 = sld [smem:[#allocation8 + $0x203]]  ;;  %v787_v33 = vstv %s1534_s23  ;;  %v773_v40 = vstv %s1548_s26 }
  0x8c   : > { %s1564_s16 = sld [smem:[#allocation8 + $0x302]]  ;;  %s1578_s9 = sld [smem:[#allocation8 + $0x283]]  ;;  %v790_v41 = vstv %s1550_s7  ;;  %v676_v42 = vstv %s1552_s0 }
  0x8d   : > { %s1566_s21 = sld [smem:[#allocation8 + $0x382]]  ;;  %s1580_s19 = sld [smem:[#allocation8 + $0x303]]  ;;  %v692_v43 = vstv %s1554_s1 }
  0x8e   : > { %1012 = vmatmul.mubr.msk.f32.gmra.mrb[2].mxu0 %vm255_vm0, %v250_v6  ;;  %1726 = sst [smem:[#allocation24_spill]] %s1568_s18  ;;  %s1582_s18 = sld [smem:[#allocation8 + $0x383]]  ;;  %v709_v44 = vstv %s1556_s2  ;;  %v696_v53 = vstv %s1570_s28 }
  0x8f   : > { %1014 = vmatprep.mubr.msk.f32.mxu0 %vm255_vm0, %v251_v7  ;;  %v726_v45 = vstv %s1558_s3  ;;  %v713_v54 = vstv %s1572_s15  ;;  %s1730_s0 = sld [smem:[#allocation18_spill]]  ;;  %s1731_s1 = sld [smem:[#allocation23_spill]] }
  0x90   : > { %v743_v47 = vstv %s1560_s24  ;;  %v730_v55 = vstv %s1574_s27  ;;  %s1735_s24 = sld [smem:[#allocation21_spill]] }
  0x91   : > { %v760_v48 = vstv %s1562_s17  ;;  %v747_v56 = vstv %s1576_s4 }
  0x92   : > { %1015 = vmatmul.mubr.msk.f32.gmra.mrb[4].mxu0 %vm255_vm0, %v252_v8  ;;  %v777_v49 = vstv %s1564_s16  ;;  %v764_v57 = vstv %s1578_s9  ;;  %s1295_s9 = smov [#allocation9]  }
  0x93   : > { %1017 = vmatprep.mubr.msk.f32.mxu0 %vm255_vm0, %v253_v9  ;;  %v794_v50 = vstv %s1566_s21  ;;  %v781_v58 = vstv %s1580_s19  ;;  %s1215_s7 = sshll.u32 %s1295_s9, 4  ;;  %s1216_s7 = int_to_ptr.vmem [resolvable:$false] %s1215_s7 }
  0x94   : > { %1727 = sst [smem:[#allocation25_spill]] %s1582_s18  ;;  %s1728_s18 = sld [smem:[#allocation24_spill]] }
  0x95   : > { %s1729_s25 = sld [smem:[#allocation25_spill]]  ;;  %s981_s2 = sshll.u32 %s1730_s0, 10 }
  0x96   : > { %1018 = vmatmul.mubr.msk.f32.gmra.mrb[6].mxu0 %vm255_vm0, %v254_v10  ;;  %s1732_s3 = sshll.u32 %s1731_s1, 6  ;;  %s804_s27 = scalar_lea.sflag [#allocation4], %s1731_s1 }
  0x97   : > { %s242_s4 = scalar_lea.vmem [#allocation9], %s1732_s3  ;;  %p1736_p12 = scmp.ne.s32.totalorder %s1735_s24, 0 }
  0x98   : > { %s817_s15 = sshll.u32 %s242_s4, 4  ;;  %s1217_s6 = scalar_lea.vmem %s1216_s7, 2048  ;;  %s1624_s15 = int_to_ptr.vmem [resolvable:$true] %s817_s15 }
  0x99   : > { %s1211_s28 = scalar_lea.vmem %s1624_s15, 1024  ;;  %p1218_p9 = scmp.lt.s32.totalorder %s1624_s15, %s1216_s7 }
  0x9a   : > { %v680_v52 = vstv %s1728_s18  ;;  %s1733_s18 = sld [smem:[#allocation30_spill]]  ;;  %p1212_p11 = scmp.ne.s32.totalorder %s1624_s15, %s1211_s28 }
  0x9b   : > { %v798_v59 = vstv %s1729_s25  ;;  %p1219_p2 = scmp.lt.s32.totalorder %s1217_s6, %s1211_s28 }
  0x9c   : > { %p1213_p13 = pnand %p1212_p11, %p1736_p12 }
  0x9d   : > { %p1220_p5 = por %p1219_p2, %p1218_p9 }
  0x9e   : > { %p1214_p3 = pneg %p1213_p13 }
  0xa0   : > { %s1734_s19 = smov %s1733_s18  ;;  %s1622_s21 = scalar_lea.hbm %s1733_s18, %s981_s2 }
  0xa1   : > { %p1221_p0 = pnand %p1220_p5, %p1214_p3 }
 0x15d   : > { %v1010_v13 = vpop.f32.mrb[0].mxu0 }
 0x15e   : > { %v346_v14 = vpop.f32.mrb[1].mxu0 }
 0x15f   : > { %v1053_v15 = vpack.c.bf16 %v1010_v13, %v346_v14 }
 0x161   : > { %v1013_v16 = vpop.f32.mrb[2].mxu0  ;;  %1054 = vmatpush3.bf16.msra.mxu1 %v1053_v15 }
 0x162   : > { %v356_v18 = vpop.f32.mrb[3].mxu0  ;;  %1055 = vmatprep.subr.bf16.mxu1 %v1292_v11 }
 0x163   : > { %v1056_v19 = vpack.c.bf16 %v1013_v16, %v356_v18 }
 0x164   : > { %1025 = vmatmul.mubr.msk.f32.vlgmr.msra.gmra.mrb[0].mxu1 %vm255_vm0, %v246_v17 }
 0x165   : > { %v1016_v20 = vpop.f32.mrb[4].mxu0  ;;  %1057 = vmatpush3.bf16.msra.mxu1 %v1056_v19  ;;  %1031 = vmatprep.mubr.msk.f32.mxu1 %vm1293_vm1, %v1294_v12 }
 0x166   : > { %v366_v21 = vpop.f32.mrb[5].mxu0  ;;  %1058 = vmatprep.subr.bf16.mxu1 %v1292_v11 }
 0x167   : > { %v1059_v22 = vpack.c.bf16 %v1016_v20, %v366_v21 }
 0x168   : > { %1032 = vmatmul.mubr.msk.f32.vlgmr.msra.gmra.mrb[2].mxu1 %vm255_vm0, %v246_v17 }
 0x169   : > { %v1019_v23 = vpop.f32.mrb[6].mxu0  ;;  %1060 = vmatpush3.bf16.msra.mxu1 %v1059_v22  ;;  %1038 = vmatprep.mubr.msk.f32.mxu1 %vm1293_vm1, %v1294_v12 }
 0x16a   : > { %v376_v24 = vpop.f32.mrb[7].mxu0  ;;  %1061 = vmatprep.subr.bf16.mxu1 %v1292_v11 }
 0x16b   : > { %v1062_v25 = vpack.c.bf16 %v1019_v23, %v376_v24 }
 0x16c   : > { %1039 = vmatmul.mubr.msk.f32.vlgmr.msra.gmra.mrb[4].mxu1 %vm255_vm0, %v246_v17 }
 0x16d   : > { %1063 = vmatpush3.bf16.msra.mxu1 %v1062_v25  ;;  %1045 = vmatprep.mubr.msk.f32.mxu1 %vm1293_vm1, %v1294_v12 }
 0x170   : > { %1046 = vmatmul.mubr.msk.f32.vlgmr.msra.gmra.mrb[6].mxu1 %vm255_vm0, %v246_v17 }
 0x237   : > { %v454_v46 = vpop.f32.mrb[0].mxu1 }
 0x238   : > { %v1026_v51 = vpop.f32.mrb[1].mxu1  ;;  %v670_v60 = vmul.f32 %v669_v26, %v454_v46  ;;  %v686_v61 = vmul.f32 %v685_v27, %v454_v46  ;;  %v703_v62 = vmul.f32 %v702_v28, %v454_v46  ;;  %v720_v63 = vmul.f32 %v719_v29, %v454_v46 }
 0x239   : > { %v737_v0 = vmul.f32 %v736_v30, %v454_v46  ;;  %v754_v1 = vmul.f32 %v753_v31, %v454_v46  ;;  %v771_v2 = vmul.f32 %v770_v32, %v454_v46  ;;  %v788_v3 = vmul.f32 %v787_v33, %v454_v46 }
 0x23b   : > { %v524_v4 = vpop.f32.mrb[2].mxu1 }
 0x23c   : > { %v673_v5 = vmul.f32 %v672_v34, %v524_v4  ;;  %v689_v6 = vmul.f32 %v688_v35, %v524_v4  ;;  %v706_v7 = vmul.f32 %v705_v36, %v524_v4  ;;  %v723_v8 = vmul.f32 %v722_v37, %v524_v4  ;;  %v1033_v9 = vpop.f32.mrb[3].mxu1 }
 0x23d   : > { %v740_v10 = vmul.f32 %v739_v38, %v524_v4  ;;  %v757_v11 = vmul.f32 %v756_v39, %v524_v4  ;;  %v774_v12 = vmul.f32 %v773_v40, %v524_v4  ;;  %v791_v13 = vmul.f32 %v790_v41, %v524_v4 }
 0x23e   : > { %v674_v14 = vadd.f32 %v673_v5, %v670_v60  ;;  %v690_v15 = vadd.f32 %v689_v6, %v686_v61  ;;  %v707_v16 = vadd.f32 %v706_v7, %v703_v62  ;;  %v724_v17 = vadd.f32 %v723_v8, %v720_v63 }
 0x23f   : > { %v741_v18 = vadd.f32 %v740_v10, %v737_v0  ;;  %v758_v19 = vadd.f32 %v757_v11, %v754_v1  ;;  %v775_v20 = vadd.f32 %v774_v12, %v771_v2  ;;  %v792_v21 = vadd.f32 %v791_v13, %v788_v3  ;;  %v594_v22 = vpop.f32.mrb[4].mxu1 }
 0x240   : > { %v677_v23 = vmul.f32 %v676_v42, %v594_v22  ;;  %v693_v24 = vmul.f32 %v692_v43, %v594_v22  ;;  %v710_v25 = vmul.f32 %v709_v44, %v594_v22  ;;  %v727_v26 = vmul.f32 %v726_v45, %v594_v22  ;;  %v1040_v27 = vpop.f32.mrb[5].mxu1 }
 0x241   : > { %v744_v28 = vmul.f32 %v743_v47, %v594_v22  ;;  %v761_v29 = vmul.f32 %v760_v48, %v594_v22  ;;  %v778_v30 = vmul.f32 %v777_v49, %v594_v22  ;;  %v795_v31 = vmul.f32 %v794_v50, %v594_v22 }
 0x242   : > { %v678_v32 = vadd.f32 %v677_v23, %v674_v14  ;;  %v694_v33 = vadd.f32 %v693_v24, %v690_v15  ;;  %v711_v34 = vadd.f32 %v710_v25, %v707_v16  ;;  %v728_v35 = vadd.f32 %v727_v26, %v724_v17 }
 0x243   : > { %v745_v36 = vadd.f32 %v744_v28, %v741_v18  ;;  %v762_v37 = vadd.f32 %v761_v29, %v758_v19  ;;  %v779_v38 = vadd.f32 %v778_v30, %v775_v20  ;;  %v796_v39 = vadd.f32 %v795_v31, %v792_v21  ;;  %v664_v40 = vpop.f32.mrb[6].mxu1 }
 0x244   : > { %v681_v41 = vmul.f32 %v680_v52, %v664_v40  ;;  %v697_v42 = vmul.f32 %v696_v53, %v664_v40  ;;  %v714_v43 = vmul.f32 %v713_v54, %v664_v40  ;;  %v731_v44 = vmul.f32 %v730_v55, %v664_v40  ;;  %v1047_v45 = vpop.f32.mrb[7].mxu1 }
 0x245   : > { %v748_v46 = vmul.f32 %v747_v56, %v664_v40  ;;  %v765_v47 = vmul.f32 %v764_v57, %v664_v40  ;;  %v782_v48 = vmul.f32 %v781_v58, %v664_v40  ;;  %v799_v49 = vmul.f32 %v798_v59, %v664_v40 }
 0x246   : > { %v682_v50 = vadd.f32 %v681_v41, %v678_v32  ;;  %v698_v51 = vadd.f32 %v697_v42, %v694_v33  ;;  %v715_v60 = vadd.f32 %v714_v43, %v711_v34  ;;  %v732_v61 = vadd.f32 %v731_v44, %v728_v35 }
 0x247   : > { %v749_v52 = vadd.f32 %v748_v46, %v745_v36  ;;  %v766_v53 = vadd.f32 %v765_v47, %v762_v37  ;;  %v783_v54 = vadd.f32 %v782_v48, %v779_v38  ;;  %v800_v55 = vadd.f32 %v799_v49, %v796_v39 }
 0x248   : > { %683 = vst [vmem:[%s242_s4] sm:$0xff] %v682_v50  ;;  %944 = vst [vmem:[%s242_s4 + $0x8] sm:$0xff] %v698_v51 }
 0x249   : > { %949 = vst [vmem:[%s242_s4 + $0x10] sm:$0xff] %v715_v60  ;;  %954 = vst [vmem:[%s242_s4 + $0x18] sm:$0xff] %v732_v61 }
 0x24a   : > { %959 = vst [vmem:[%s242_s4 + $0x20] sm:$0xff] %v749_v52  ;;  %964 = vst [vmem:[%s242_s4 + $0x28] sm:$0xff] %v766_v53 }
 0x24b   : > { %969 = vst [vmem:[%s242_s4 + $0x30] sm:$0xff] %v783_v54  ;;  %974 = vst [vmem:[%s242_s4 + $0x38] sm:$0xff] %v800_v55 }
 0x24c   : > { %1224 = shalt.err (!%p1221_p0)
}
 0x24d   : > { %s1225_s13 = scalar_lea.hbm %s1622_s21, 1024  ;;  %s1229_s14 = scalar_lea.hbm %s1734_s19, 2048 }
 0x24e   : > { %p1226_p10 = scmp.ne.s32.totalorder %s1622_s21, %s1225_s13  ;;  %p1230_p8 = scmp.lt.u32.totalorder %s1622_s21, %s1734_s19 }
 0x24f   : > { %p1231_p1 = scmp.lt.u32.totalorder %s1229_s14, %s1225_s13  ;;  %p1233_p11 = scmp.lt.u32.totalorder %s1225_s13, %s1622_s21 }
 0x250   : > { %p1227_p4 = pnand %p1226_p10, %p1736_p12 }
 0x251   : > { %p1232_p6 = por %p1231_p1, %p1230_p8 }
 0x252   : > { %p1228_p7 = pneg %p1227_p4 }
 0x253   : > { %p1234_p13 = por %p1233_p11, %p1232_p6 }
 0x255   : > { %p1235_p3 = pnand %p1234_p13, %p1228_p7 }
 0x257   : > { %1238 = shalt.err (!%p1235_p3)
}
 0x258   : > { %s1296_s30 = smov 128   ;;  %s1297_s11 = smov 8  }
 0x259   : > { %1074 = dma.vmem_to_hbm [thread:$0]  (%p1736_p12), %s1624_s15, 1024, %s1622_s21, %s804_s27, %s1296_s30, %s1296_s30, %s1297_s11  }
 0x25a PF: > { %s1737_s12 = sld [smem:[#allocation14_spill]]  ;;  %s1738_s29 = sld [smem:[#allocation22_spill]] }
 0x25b   : > { %s1739_s10 = sld [smem:[#allocation17_spill]] }
 0x260   : > { %s832_s22 = sand.u32 1, %s1737_s12   ;;  %p1740_p9 = scmp.ne.s32.totalorder %s1738_s29, 0 }
 0x261   : > { %p1741_p2 = scmp.ge.s32.totalorder %s1739_s10, 2  ;;  %s833_s26 = scalar_lea.sflag [#allocation4], %s832_s22 }
 0x263   : > { %p1088_p5 = pnand %p1741_p2, %p1740_p9 }
 0x265   : > { %1268 = dma.done.wait (!%p1088_p5), %s833_s26, 1024  }
 0x266   : > { %1270 = vsyncadd (!%p1088_p5), %s833_s26, 4294966272  ;;  %s1742_s18 = sld [smem:[#allocation19_spill]]  ;;  %s1743_s15 = sld [smem:[#allocation15_spill]] }
 0x267   : > { %s1744_s16 = sld [smem:[#allocation16_spill]]  ;;  %s1745_s17 = sld [smem:[#allocation20_spill]] }
 0x26c   : > { %p19_p0 = scmp.ge.s32.totalorder %s1742_s18, 4  }
 0x26e   :  { %21 = sbr.rel (!%p19_p0) target bundleno = 13 (0xd), region = 97 }
 0x275   :  { %838 = vsyncpa [#allocation3], 1 }
 0x276   :  { %840 = vsyncpa [#allocation3 + $0x1], 1 }
 0x277   :  { %841 = vsyncpa [#allocation7], 1 }
 0x278   :  { %842 = vsyncpa [#allocation4], 1 }
 0x279   :  { %844 = vsyncpa [#allocation4 + $0x1], 1 }
 0x27a   :  { %845 = vsyncpa [#allocation5], 1 }
 0x27b   :  { %847 = vsyncpa [#allocation5 + $0x1], 1 }

</bundles_post_ra>
